<compile_context>
chip_gen: v5e
topology: v5e:2x2
jax: 0.10.0
libtpu: 0.0.40
codegen_flags: <defaults>
</compile_context>

<pallas_src>
import math

import jax
import jax.numpy as jnp
import numpy as np
from jax import lax
from jax.experimental import pallas as pl
from jax.experimental.pallas import tpu as pltpu

K = 32            # embed dim
H = 4             # num heads
D = K // H        # head dim = 8
L = 8             # sequence length
N = 2             # batch
NL = N * L        # flattened rows = 16
HS = H * NL       # head-batched score lanes = 64
EPS = 1e-5        # nn.LayerNorm default eps


def _layernorm(x, gamma, beta):
    mu = jnp.mean(x, axis=-1, keepdims=True)
    var = jnp.mean((x - mu) ** 2, axis=-1, keepdims=True)   # biased variance (PyTorch LN)
    return (x - mu) * lax.rsqrt(var + EPS) * gamma + beta


def transformer_block_kernel(x_ref,       # (NL, 3K)       [x_q | x_k | x_v] lane-concatenated
                             w_qkv_ref,   # (3K, 3K)       block-diag [Wq^T*scale ; Wk^T ; Wv^T]
                             wo_ref,      # (K, K)         W_out^T
                             w1_ref,      # (K, 4K)        W1^T
                             w2_ref,      # (4K, K)        W2^T
                             mask64_ref,  # (NL+HS, HS)    rows 0:16 batch mask, rows 16:80 segment block-ones
                             headsel_ref, # (HS, K)        1 where row//NL == lane//D (head selector)
                             vec_ref,     # (8, 4K)        packed bias / gamma / beta rows
                             out_ref):    # (NL, K)
    x = x_ref[...]                                        # (16, 96)
    vec = vec_ref[...]                                    # (8, 128)

    b_qkv = vec[0:1, 0:3 * K]                             # (1, 96)   scale folded into q part
    b1    = vec[1:2, :]                                   # (1, 128)
    b_out = vec[2:3, 0:K]
    g1, be1 = vec[3:4, 0:K], vec[4:5, 0:K]
    g2, be2 = vec[5:6, 0:K], vec[6:7, 0:K]
    b2 = vec[7:8, 0:K]

    batmask  = mask64_ref[0:NL, :]                        # (16, 64) 1 where query row / key col same batch
    seg_ones = mask64_ref[NL:NL + HS, :]                  # (64, 64) block-ones per 16-lane head segment
    head_sel = headsel_ref[...]                           # (64, 32)

    # ---- fused QKV projection: one MXU push, one bias add ----
    proj = jnp.dot(x, w_qkv_ref[...], preferred_element_type=jnp.float32) + b_qkv   # (16, 96)
    q = proj[:, 0:K]                                      # (16, 32), already scaled by 1/sqrt(D)
    k = proj[:, K:2 * K]
    v = proj[:, 2 * K:3 * K]

    # ---- block-diagonal K / V (head h occupies rows h*NL:(h+1)*NL, lanes h*D:(h+1)*D) ----
    k_bd = jnp.concatenate([k, k, k, k], axis=0) * head_sel    # (64, 32)
    v_bd = jnp.concatenate([v, v, v, v], axis=0) * head_sel    # (64, 32)

    # ---- all-head scores in one (16,64) slab: q @ k_bd^T (rhs-transposed dot, single push) ----
    s = lax.dot_general(q, k_bd, (((1,), (1,)), ((), ())),
                        preferred_element_type=jnp.float32)    # (16, 64)

    # ---- head-batched softmax: one max / exp / segment-sum / reciprocal ----
    m = jnp.max(s, axis=-1, keepdims=True)                 # row max: constant per head segment -> valid shift
    p = jnp.exp(s - m) * batmask                           # multiplicative batch mask after exp
    denom = jnp.dot(p, seg_ones, preferred_element_type=jnp.float32)   # lane-aligned per-segment sums
    p = p * pl.reciprocal(denom, approx=True)              # EUP slot; ~1e-4 rel err, inside tolerance

    # ---- P @ V (all heads, one push; heads land at lanes h*D) + full-width out-projection ----
    o = jnp.dot(p, v_bd, preferred_element_type=jnp.float32)               # (16, 32)
    attn = jnp.dot(o, wo_ref[...], preferred_element_type=jnp.float32) + b_out

    # ---- residual + LayerNorm1 ----
    x_q = x[:, 0:K]
    x1 = _layernorm(attn + x_q, g1, be1)

    # ---- FFN: Linear(K -> 4K) -> ReLU -> Linear(4K -> K) ----
    h1 = jnp.maximum(jnp.dot(x1, w1_ref[...], preferred_element_type=jnp.float32) + b1, 0.0)
    ff = jnp.dot(h1, w2_ref[...], preferred_element_type=jnp.float32) + b2

    # ---- residual + LayerNorm2 ----
    out_ref[...] = _layernorm(ff + x1, g2, be2).astype(out_ref.dtype)
    # TODO(synk): attn_mask / key_padding_mask / dropout are not implemented (mask=None, eval mode).


def _prepare_params(p):
    """One-time host/XLA-side repacking: block-diag fused weights, folded scale/biases, masks."""
    scale = 1.0 / math.sqrt(D)
    w_in = p["w_in"]                               # (3K, K): rows [Wq; Wk; Wv]
    b_in = p["b_in"][0]                            # (3K,)
    wq, wk, wv = w_in[0:K], w_in[K:2 * K], w_in[2 * K:3 * K]

    w_qkv = jnp.zeros((3 * K, 3 * K), jnp.float32)
    w_qkv = w_qkv.at[0:K, 0:K].set(wq.T * scale)           # scale folded into Wq^T
    w_qkv = w_qkv.at[K:2 * K, K:2 * K].set(wk.T)
    w_qkv = w_qkv.at[2 * K:3 * K, 2 * K:3 * K].set(wv.T)

    b_qkv = jnp.concatenate([b_in[0:K] * scale, b_in[K:2 * K], b_in[2 * K:3 * K]])  # (96,)

    vec = jnp.zeros((8, 4 * K), jnp.float32)
    vec = vec.at[0, 0:3 * K].set(b_qkv)
    vec = vec.at[1, :].set(p["b1"][0])
    vec = vec.at[2, 0:K].set(p["b_out"][0])
    vec = vec.at[3, 0:K].set(p["g1"][0])
    vec = vec.at[4, 0:K].set(p["be1"][0])
    vec = vec.at[5, 0:K].set(p["g2"][0])
    vec = vec.at[6, 0:K].set(p["be2"][0])
    vec = vec.at[7, 0:K].set(p["b2"][0])

    # Host-side constant masks (compile-time constants for fixed N, L, H) -- review item 5.
    lane = np.arange(HS)                            # i = head*NL + key_row
    row = np.arange(NL)
    feat = np.arange(K)
    batmask = (row[:, None] // L == (lane[None, :] % NL) // L).astype(np.float32)     # (NL, HS)
    seg_ones = (lane[:, None] // NL == lane[None, :] // NL).astype(np.float32)        # (HS, HS)
    head_sel = (lane[:, None] // NL == feat[None, :] // D).astype(np.float32)         # (HS, K)
    mask64 = jnp.asarray(np.concatenate([batmask, seg_ones], axis=0))                 # (NL+HS, HS)

    return dict(w_qkv=w_qkv, wo_t=p["w_out"].T, w1_t=p["w1"].T, w2_t=p["w2"].T,
                mask64=mask64, head_sel=jnp.asarray(head_sel), vec=vec)


def transformer_block(value, key, query, params):
    """value/key/query: (L, N, K) float32 — same (seq, batch, embed) layout as PyTorch."""
    pp = _prepare_params(params)

    def flat(x):                                    # (L, N, K) -> (N*L, K), batch-major rows
        return jnp.transpose(x, (1, 0, 2)).reshape(NL, K)

    x_cat = jnp.concatenate([flat(query), flat(key), flat(value)], axis=1)            # (16, 96)

    out = pl.pallas_call(
        transformer_block_kernel,
        out_shape=jax.ShapeDtypeStruct((NL, K), jnp.float32),
        grid=(1,),
        in_specs=[
            pl.BlockSpec((NL, 3 * K), lambda i: (0, 0)),
            pl.BlockSpec((3 * K, 3 * K), lambda i: (0, 0)),
            pl.BlockSpec((K, K), lambda i: (0, 0)),
            pl.BlockSpec((K, 4 * K), lambda i: (0, 0)),
            pl.BlockSpec((4 * K, K), lambda i: (0, 0)),
            pl.BlockSpec((NL + HS, HS), lambda i: (0, 0)),
            pl.BlockSpec((HS, K), lambda i: (0, 0)),
            pl.BlockSpec((8, 4 * K), lambda i: (0, 0)),
        ],
        out_specs=pl.BlockSpec((NL, K), lambda i: (0, 0)),
        compiler_params=pltpu.CompilerParams(dimension_semantics=("arbitrary",)),
    )(x_cat, pp["w_qkv"], pp["wo_t"], pp["w1_t"], pp["w2_t"],
      pp["mask64"], pp["head_sel"], pp["vec"])

    return jnp.transpose(out.reshape(N, L, K), (1, 0, 2))                              # (L, N, K)


def reference_jax(value, key, query, p):
    """Pure-JAX reference mirroring PyTorch nn.MultiheadAttention / LayerNorm / FFN."""
    q = jnp.transpose(query, (1, 0, 2))             # (N, L, K)
    k = jnp.transpose(key, (1, 0, 2))
    v = jnp.transpose(value, (1, 0, 2))

    w_in, b_in = p["w_in"], p["b_in"][0]
    qp = q @ w_in[0:K].T + b_in[0:K]
    kp = k @ w_in[K:2 * K].T + b_in[K:2 * K]
    vp = v @ w_in[2 * K:3 * K].T + b_in[2 * K:3 * K]

    def split_heads(x):                             # (N, L, K) -> (N, H, L, D)
        return jnp.transpose(x.reshape(N, L, H, D), (0, 2, 1, 3))

    qh, kh, vh = split_heads(qp), split_heads(kp), split_heads(vp)
    s = jnp.einsum("nhld,nhmd->nhlm", qh, kh) / math.sqrt(D)
    a = jax.nn.softmax(s, axis=-1)
    o = jnp.einsum("nhlm,nhmd->nhld", a, vh)
    o = jnp.transpose(o, (0, 2, 1, 3)).reshape(N, L, K)
    attn_out = o @ p["w_out"].T + p["b_out"][0]

    def ln(x, g, b):
        mu = x.mean(-1, keepdims=True)
        var = ((x - mu) ** 2).mean(-1, keepdims=True)
        return (x - mu) * lax.rsqrt(var + EPS) * g[0] + b[0]

    x = ln(attn_out + q, p["g1"], p["be1"])
    ff = jnp.maximum(x @ p["w1"].T + p["b1"][0], 0.0) @ p["w2"].T + p["b2"][0]
    out = ln(ff + x, p["g2"], p["be2"])
    return jnp.transpose(out, (1, 0, 2))


def make_params(rng):
    keys = jax.random.split(rng, 12)
    s = 0.05
    return {
        "w_in":  s * jax.random.normal(keys[0], (3 * K, K), jnp.float32),
        "b_in":  0.02 * jax.random.normal(keys[1], (1, 3 * K), jnp.float32),
        "w_out": s * jax.random.normal(keys[2], (K, K), jnp.float32),
        "b_out": 0.02 * jax.random.normal(keys[3], (1, K), jnp.float32),
        "g1":    1.0 + 0.05 * jax.random.normal(keys[4], (1, K), jnp.float32),
        "be1":   0.02 * jax.random.normal(keys[5], (1, K), jnp.float32),
        "g2":    1.0 + 0.05 * jax.random.normal(keys[6], (1, K), jnp.float32),
        "be2":   0.02 * jax.random.normal(keys[7], (1, K), jnp.float32),
        "w1":    s * jax.random.normal(keys[8], (4 * K, K), jnp.float32),
        "b1":    0.01 * jax.random.normal(keys[9], (1, 4 * K), jnp.float32),
        "w2":    s * jax.random.normal(keys[10], (K, 4 * K), jnp.float32),
        "b2":    0.01 * jax.random.normal(keys[11], (1, K), jnp.float32),
    }


if __name__ == "__main__":
    root = jax.random.PRNGKey(0)
    k_p, k_v, k_k, k_q = jax.random.split(root, 4)

    params = make_params(k_p)
    value = jax.random.normal(k_v, (L, N, K), jnp.float32)
    key_t = jax.random.normal(k_k, (L, N, K), jnp.float32)
    query = jax.random.normal(k_q, (L, N, K), jnp.float32)

    out = transformer_block(value, key_t, query, params)
    out = jax.block_until_ready(out)

    ref = jax.block_until_ready(reference_jax(value, key_t, query, params))
    np.testing.assert_allclose(np.asarray(out), np.asarray(ref), rtol=1e-2, atol=1e-2)

    print("KERNEL_OK")
</pallas_src>

<mosaic_0001>
module attributes {stable_mosaic.version = 11 : i64} {
  func.func @transformer_block_kernel(%arg0: i32, %arg1: memref<16x96xf32, #tpu.memory_space<vmem>>, %arg2: memref<96x96xf32, #tpu.memory_space<vmem>>, %arg3: memref<32x32xf32, #tpu.memory_space<vmem>>, %arg4: memref<32x128xf32, #tpu.memory_space<vmem>>, %arg5: memref<128x32xf32, #tpu.memory_space<vmem>>, %arg6: memref<80x64xf32, #tpu.memory_space<vmem>>, %arg7: memref<64x32xf32, #tpu.memory_space<vmem>>, %arg8: memref<8x128xf32, #tpu.memory_space<vmem>>, %arg9: memref<16x32xf32, #tpu.memory_space<vmem>>) attributes {dimension_semantics = [#tpu.dimension_semantics<arbitrary>], iteration_bounds = array<i64: 1>, scalar_prefetch = 0 : i64, scratch_operands = 0 : i64, tpu.core_type = #tpu.core_type<tc>, window_params = [{pipeline_mode = #tpu.pipeline_mode<synchronous>, transform_indices = @transform_0, window_bounds = array<i64: 16, 96>}, {pipeline_mode = #tpu.pipeline_mode<synchronous>, transform_indices = @transform_1, window_bounds = array<i64: 96, 96>}, {pipeline_mode = #tpu.pipeline_mode<synchronous>, transform_indices = @transform_2, window_bounds = array<i64: 32, 32>}, {pipeline_mode = #tpu.pipeline_mode<synchronous>, transform_indices = @transform_3, window_bounds = array<i64: 32, 128>}, {pipeline_mode = #tpu.pipeline_mode<synchronous>, transform_indices = @transform_4, window_bounds = array<i64: 128, 32>}, {pipeline_mode = #tpu.pipeline_mode<synchronous>, transform_indices = @transform_5, window_bounds = array<i64: 80, 64>}, {pipeline_mode = #tpu.pipeline_mode<synchronous>, transform_indices = @transform_6, window_bounds = array<i64: 64, 32>}, {pipeline_mode = #tpu.pipeline_mode<synchronous>, transform_indices = @transform_7, window_bounds = array<i64: 8, 128>}, {pipeline_mode = #tpu.pipeline_mode<synchronous>, transform_indices = @transform_8, window_bounds = array<i64: 16, 32>}]} {
    %c0 = arith.constant 0 : index
    %c0_0 = arith.constant 0 : index
    %0 = vector.load %arg1[%c0, %c0_0] : memref<16x96xf32, #tpu.memory_space<vmem>>, vector<16x96xf32>
    %c0_1 = arith.constant 0 : index
    %c0_2 = arith.constant 0 : index
    %1 = vector.load %arg8[%c0_1, %c0_2] : memref<8x128xf32, #tpu.memory_space<vmem>>, vector<8x128xf32>
    %2 = vector.extract_strided_slice %1 {offsets = [0, 0], sizes = [1, 96], strides = [1, 1]} : vector<8x128xf32> to vector<1x96xf32>
    %3 = vector.extract_strided_slice %1 {offsets = [1, 0], sizes = [1, 128], strides = [1, 1]} : vector<8x128xf32> to vector<1x128xf32>
    %4 = vector.extract_strided_slice %1 {offsets = [2, 0], sizes = [1, 32], strides = [1, 1]} : vector<8x128xf32> to vector<1x32xf32>
    %5 = vector.extract_strided_slice %1 {offsets = [3, 0], sizes = [1, 32], strides = [1, 1]} : vector<8x128xf32> to vector<1x32xf32>
    %6 = vector.extract_strided_slice %1 {offsets = [4, 0], sizes = [1, 32], strides = [1, 1]} : vector<8x128xf32> to vector<1x32xf32>
    %7 = vector.extract_strided_slice %1 {offsets = [5, 0], sizes = [1, 32], strides = [1, 1]} : vector<8x128xf32> to vector<1x32xf32>
    %8 = vector.extract_strided_slice %1 {offsets = [6, 0], sizes = [1, 32], strides = [1, 1]} : vector<8x128xf32> to vector<1x32xf32>
    %9 = vector.extract_strided_slice %1 {offsets = [7, 0], sizes = [1, 32], strides = [1, 1]} : vector<8x128xf32> to vector<1x32xf32>
    %c0_3 = arith.constant 0 : index
    %c0_4 = arith.constant 0 : index
    %10 = vector.load %arg6[%c0_3, %c0_4] : memref<80x64xf32, #tpu.memory_space<vmem>>, vector<16x64xf32>
    %c16 = arith.constant 16 : index
    %c0_5 = arith.constant 0 : index
    %11 = vector.load %arg6[%c16, %c0_5] : memref<80x64xf32, #tpu.memory_space<vmem>>, vector<64x64xf32>
    %c0_6 = arith.constant 0 : index
    %c0_7 = arith.constant 0 : index
    %12 = vector.load %arg7[%c0_6, %c0_7] : memref<64x32xf32, #tpu.memory_space<vmem>>, vector<64x32xf32>
    %c0_8 = arith.constant 0 : index
    %c0_9 = arith.constant 0 : index
    %13 = vector.load %arg2[%c0_8, %c0_9] : memref<96x96xf32, #tpu.memory_space<vmem>>, vector<96x96xf32>
    %cst = arith.constant dense<0.000000e+00> : vector<16x96xf32>
    %14 = tpu.matmul %0, %13, %cst {dimension_numbers = #tpu.dot_dimension_numbers<[1], [0], [0], [1], [0, 0, 1, 1], [], []>} : vector<16x96xf32>, vector<96x96xf32>, vector<16x96xf32> -> vector<16x96xf32>
    %15 = vector.broadcast %2 : vector<1x96xf32> to vector<16x96xf32>
    %16 = arith.addf %14, %15 : vector<16x96xf32>
    %17 = vector.extract_strided_slice %16 {offsets = [0, 0], sizes = [16, 32], strides = [1, 1]} : vector<16x96xf32> to vector<16x32xf32>
    %18 = vector.extract_strided_slice %16 {offsets = [0, 32], sizes = [16, 32], strides = [1, 1]} : vector<16x96xf32> to vector<16x32xf32>
    %19 = vector.extract_strided_slice %16 {offsets = [0, 64], sizes = [16, 32], strides = [1, 1]} : vector<16x96xf32> to vector<16x32xf32>
    %20 = tpu.concatenate %18, %18, %18, %18 in 0 : vector<16x32xf32>, vector<16x32xf32>, vector<16x32xf32>, vector<16x32xf32> -> vector<64x32xf32>
    %21 = arith.mulf %20, %12 : vector<64x32xf32>
    %22 = tpu.concatenate %19, %19, %19, %19 in 0 : vector<16x32xf32>, vector<16x32xf32>, vector<16x32xf32>, vector<16x32xf32> -> vector<64x32xf32>
    %23 = arith.mulf %22, %12 : vector<64x32xf32>
    %cst_10 = arith.constant dense<0.000000e+00> : vector<16x64xf32>
    %24 = tpu.matmul %17, %21, %cst_10 {dimension_numbers = #tpu.dot_dimension_numbers<[1], [1], [0], [0], [0, 0, 1, 0], [], []>} : vector<16x32xf32>, vector<64x32xf32>, vector<16x64xf32> -> vector<16x64xf32>
    %cst_11 = arith.constant dense<0xFF800000> : vector<16xf32>
    %25 = vector.multi_reduction <maximumf>, %24, %cst_11 [1] : vector<16x64xf32> to vector<16xf32>
    %26 = vector.shape_cast %25 : vector<16xf32> to vector<16x1xf32>
    %27 = vector.broadcast %26 : vector<16x1xf32> to vector<16x64xf32>
    %28 = arith.subf %24, %27 : vector<16x64xf32>
    %29 = math.exp %28 : vector<16x64xf32>
    %30 = arith.mulf %29, %10 : vector<16x64xf32>
    %cst_12 = arith.constant dense<0.000000e+00> : vector<16x64xf32>
    %31 = tpu.matmul %30, %11, %cst_12 {dimension_numbers = #tpu.dot_dimension_numbers<[1], [0], [0], [1], [0, 0, 1, 1], [], []>} : vector<16x64xf32>, vector<64x64xf32>, vector<16x64xf32> -> vector<16x64xf32>
    %32 = tpu.reciprocal %31 {approx = true} : vector<16x64xf32> -> vector<16x64xf32>
    %33 = arith.mulf %30, %32 : vector<16x64xf32>
    %cst_13 = arith.constant dense<0.000000e+00> : vector<16x32xf32>
    %34 = tpu.matmul %33, %23, %cst_13 {dimension_numbers = #tpu.dot_dimension_numbers<[1], [0], [0], [1], [0, 0, 1, 1], [], []>} : vector<16x64xf32>, vector<64x32xf32>, vector<16x32xf32> -> vector<16x32xf32>
    %c0_14 = arith.constant 0 : index
    %c0_15 = arith.constant 0 : index
    %35 = vector.load %arg3[%c0_14, %c0_15] : memref<32x32xf32, #tpu.memory_space<vmem>>, vector<32x32xf32>
    %cst_16 = arith.constant dense<0.000000e+00> : vector<16x32xf32>
    %36 = tpu.matmul %34, %35, %cst_16 {dimension_numbers = #tpu.dot_dimension_numbers<[1], [0], [0], [1], [0, 0, 1, 1], [], []>} : vector<16x32xf32>, vector<32x32xf32>, vector<16x32xf32> -> vector<16x32xf32>
    %37 = vector.broadcast %4 : vector<1x32xf32> to vector<16x32xf32>
    %38 = arith.addf %36, %37 : vector<16x32xf32>
    %39 = vector.extract_strided_slice %0 {offsets = [0, 0], sizes = [16, 32], strides = [1, 1]} : vector<16x96xf32> to vector<16x32xf32>
    %40 = arith.addf %38, %39 : vector<16x32xf32>
    %cst_17 = arith.constant dense<0.000000e+00> : vector<16xf32>
    %41 = vector.multi_reduction <add>, %40, %cst_17 [1] : vector<16x32xf32> to vector<16xf32>
    %42 = vector.shape_cast %41 : vector<16xf32> to vector<16x1xf32>
    %cst_18 = arith.constant 3.200000e+01 : f32
    %43 = vector.broadcast %cst_18 : f32 to vector<16x1xf32>
    %44 = arith.divf %42, %43 : vector<16x1xf32>
    %45 = vector.broadcast %44 : vector<16x1xf32> to vector<16x32xf32>
    %46 = arith.subf %40, %45 : vector<16x32xf32>
    %47 = arith.mulf %46, %46 : vector<16x32xf32>
    %cst_19 = arith.constant dense<0.000000e+00> : vector<16xf32>
    %48 = vector.multi_reduction <add>, %47, %cst_19 [1] : vector<16x32xf32> to vector<16xf32>
    %49 = vector.shape_cast %48 : vector<16xf32> to vector<16x1xf32>
    %cst_20 = arith.constant 3.200000e+01 : f32
    %50 = vector.broadcast %cst_20 : f32 to vector<16x1xf32>
    %51 = arith.divf %49, %50 : vector<16x1xf32>
    %52 = vector.broadcast %44 : vector<16x1xf32> to vector<16x32xf32>
    %53 = arith.subf %40, %52 : vector<16x32xf32>
    %cst_21 = arith.constant 9.99999974E-6 : f32
    %54 = vector.broadcast %cst_21 : f32 to vector<16x1xf32>
    %55 = arith.addf %51, %54 : vector<16x1xf32>
    %56 = math.rsqrt %55 : vector<16x1xf32>
    %57 = vector.broadcast %56 : vector<16x1xf32> to vector<16x32xf32>
    %58 = arith.mulf %53, %57 : vector<16x32xf32>
    %59 = vector.broadcast %5 : vector<1x32xf32> to vector<16x32xf32>
    %60 = arith.mulf %58, %59 : vector<16x32xf32>
    %61 = vector.broadcast %6 : vector<1x32xf32> to vector<16x32xf32>
    %62 = arith.addf %60, %61 : vector<16x32xf32>
    %c0_22 = arith.constant 0 : index
    %c0_23 = arith.constant 0 : index
    %63 = vector.load %arg4[%c0_22, %c0_23] : memref<32x128xf32, #tpu.memory_space<vmem>>, vector<32x128xf32>
    %cst_24 = arith.constant dense<0.000000e+00> : vector<16x128xf32>
    %64 = tpu.matmul %62, %63, %cst_24 {dimension_numbers = #tpu.dot_dimension_numbers<[1], [0], [0], [1], [0, 0, 1, 1], [], []>} : vector<16x32xf32>, vector<32x128xf32>, vector<16x128xf32> -> vector<16x128xf32>
    %65 = vector.broadcast %3 : vector<1x128xf32> to vector<16x128xf32>
    %66 = arith.addf %64, %65 : vector<16x128xf32>
    %cst_25 = arith.constant 0.000000e+00 : f32
    %67 = vector.broadcast %cst_25 : f32 to vector<16x128xf32>
    %68 = arith.maximumf %66, %67 : vector<16x128xf32>
    %c0_26 = arith.constant 0 : index
    %c0_27 = arith.constant 0 : index
    %69 = vector.load %arg5[%c0_26, %c0_27] : memref<128x32xf32, #tpu.memory_space<vmem>>, vector<128x32xf32>
    %cst_28 = arith.constant dense<0.000000e+00> : vector<16x32xf32>
    %70 = tpu.matmul %68, %69, %cst_28 {dimension_numbers = #tpu.dot_dimension_numbers<[1], [0], [0], [1], [0, 0, 1, 1], [], []>} : vector<16x128xf32>, vector<128x32xf32>, vector<16x32xf32> -> vector<16x32xf32>
    %71 = vector.broadcast %9 : vector<1x32xf32> to vector<16x32xf32>
    %72 = arith.addf %70, %71 : vector<16x32xf32>
    %73 = arith.addf %72, %62 : vector<16x32xf32>
    %cst_29 = arith.constant dense<0.000000e+00> : vector<16xf32>
    %74 = vector.multi_reduction <add>, %73, %cst_29 [1] : vector<16x32xf32> to vector<16xf32>
    %75 = vector.shape_cast %74 : vector<16xf32> to vector<16x1xf32>
    %cst_30 = arith.constant 3.200000e+01 : f32
    %76 = vector.broadcast %cst_30 : f32 to vector<16x1xf32>
    %77 = arith.divf %75, %76 : vector<16x1xf32>
    %78 = vector.broadcast %77 : vector<16x1xf32> to vector<16x32xf32>
    %79 = arith.subf %73, %78 : vector<16x32xf32>
    %80 = arith.mulf %79, %79 : vector<16x32xf32>
    %cst_31 = arith.constant dense<0.000000e+00> : vector<16xf32>
    %81 = vector.multi_reduction <add>, %80, %cst_31 [1] : vector<16x32xf32> to vector<16xf32>
    %82 = vector.shape_cast %81 : vector<16xf32> to vector<16x1xf32>
    %cst_32 = arith.constant 3.200000e+01 : f32
    %83 = vector.broadcast %cst_32 : f32 to vector<16x1xf32>
    %84 = arith.divf %82, %83 : vector<16x1xf32>
    %85 = vector.broadcast %77 : vector<16x1xf32> to vector<16x32xf32>
    %86 = arith.subf %73, %85 : vector<16x32xf32>
    %cst_33 = arith.constant 9.99999974E-6 : f32
    %87 = vector.broadcast %cst_33 : f32 to vector<16x1xf32>
    %88 = arith.addf %84, %87 : vector<16x1xf32>
    %89 = math.rsqrt %88 : vector<16x1xf32>
    %90 = vector.broadcast %89 : vector<16x1xf32> to vector<16x32xf32>
    %91 = arith.mulf %86, %90 : vector<16x32xf32>
    %92 = vector.broadcast %7 : vector<1x32xf32> to vector<16x32xf32>
    %93 = arith.mulf %91, %92 : vector<16x32xf32>
    %94 = vector.broadcast %8 : vector<1x32xf32> to vector<16x32xf32>
    %95 = arith.addf %93, %94 : vector<16x32xf32>
    %c0_34 = arith.constant 0 : index
    %c0_35 = arith.constant 0 : index
    %96 = vector.load %arg9[%c0_34, %c0_35] : memref<16x32xf32, #tpu.memory_space<vmem>>, vector<16x32xf32>
    tpu.vector_store %arg9[%c0_34, %c0_35], %95 {strides = array<i32>} : memref<16x32xf32, #tpu.memory_space<vmem>>, vector<16x32xf32>,
    return
  }
  func.func @transform_0(%arg0: i32) -> (i32, i32) {
    %c0_i32 = arith.constant 0 : i32
    %c0_i32_0 = arith.constant 0 : i32
    %c0_i32_1 = arith.constant 0 : i32
    return %c0_i32, %c0_i32_0 : i32, i32
  }
  func.func @transform_1(%arg0: i32) -> (i32, i32) {
    %c0_i32 = arith.constant 0 : i32
    %c0_i32_0 = arith.constant 0 : i32
    %c0_i32_1 = arith.constant 0 : i32
    return %c0_i32, %c0_i32_0 : i32, i32
  }
  func.func @transform_2(%arg0: i32) -> (i32, i32) {
    %c0_i32 = arith.constant 0 : i32
    %c0_i32_0 = arith.constant 0 : i32
    %c0_i32_1 = arith.constant 0 : i32
    return %c0_i32, %c0_i32_0 : i32, i32
  }
  func.func @transform_3(%arg0: i32) -> (i32, i32) {
    %c0_i32 = arith.constant 0 : i32
    %c0_i32_0 = arith.constant 0 : i32
    %c0_i32_1 = arith.constant 0 : i32
    return %c0_i32, %c0_i32_0 : i32, i32
  }
  func.func @transform_4(%arg0: i32) -> (i32, i32) {
    %c0_i32 = arith.constant 0 : i32
    %c0_i32_0 = arith.constant 0 : i32
    %c0_i32_1 = arith.constant 0 : i32
    return %c0_i32, %c0_i32_0 : i32, i32
  }
  func.func @transform_5(%arg0: i32) -> (i32, i32) {
    %c0_i32 = arith.constant 0 : i32
    %c0_i32_0 = arith.constant 0 : i32
    %c0_i32_1 = arith.constant 0 : i32
    return %c0_i32, %c0_i32_0 : i32, i32
  }
  func.func @transform_6(%arg0: i32) -> (i32, i32) {
    %c0_i32 = arith.constant 0 : i32
    %c0_i32_0 = arith.constant 0 : i32
    %c0_i32_1 = arith.constant 0 : i32
    return %c0_i32, %c0_i32_0 : i32, i32
  }
  func.func @transform_7(%arg0: i32) -> (i32, i32) {
    %c0_i32 = arith.constant 0 : i32
    %c0_i32_0 = arith.constant 0 : i32
    %c0_i32_1 = arith.constant 0 : i32
    return %c0_i32, %c0_i32_0 : i32, i32
  }
  func.func @transform_8(%arg0: i32) -> (i32, i32) {
    %c0_i32 = arith.constant 0 : i32
    %c0_i32_0 = arith.constant 0 : i32
    %c0_i32_1 = arith.constant 0 : i32
    return %c0_i32, %c0_i32_0 : i32, i32
  }
}

</mosaic_0001>

<bundles_post_ra>
// kernel: tpu_custom_call.1
= control target key start
LH: loop header
LB: loop body
LE: loop exit
PB: predicated region body
PF: predicated region fallthrough
CT: control target
= control target key end

     0   :  { %s677_s15 = smov 32   ;;  %s1028_s0 = inlined_call_operand.vmem [shape: f32[16,96], index: 0, kind: input, shape index: {}]   ;;  %s1029_s1 = inlined_call_operand.vmem [shape: f32[96,96], index: 1, kind: input, shape index: {}]   ;;  %s1030_s2 = inlined_call_operand.vmem [shape: f32[32,32], index: 2, kind: input, shape index: {}]   ;;  %s1031_s3 = inlined_call_operand.vmem [shape: f32[32,128], index: 3, kind: input, shape index: {}]   ;;  %s1032_s4 = inlined_call_operand.vmem [shape: f32[128,32], index: 4, kind: input, shape index: {}]   ;;  %s1033_s5 = inlined_call_operand.vmem [shape: f32[80,64], index: 5, kind: input, shape index: {}]   ;;  %s1034_s6 = inlined_call_operand.vmem [shape: f32[64,32], index: 6, kind: input, shape index: {}]   ;;  %s1035_s7 = inlined_call_operand.vmem [shape: f32[8,128], index: 7, kind: input, shape index: {}]   ;;  %s1036_s8 = inlined_call_operand.hbm [shape: f32[16,32], index: 8, kind: output, shape index: {}]  }
   0x1   :  { %v62_v0 = vld [vmem:[%s1029_s1 + $0x58] sm:$0xff]  ;;  %v61_v1 = vld [vmem:[%s1029_s1 + $0x50] sm:$0xff]  ;;  %v60_v2 = vld [vmem:[%s1029_s1 + $0x48] sm:$0xff] }
   0x2   :  { %75 = vmatpush.msra.mxu0 %v62_v0  ;;  %v741_v3 = vld [vmem:[%s1034_s6 + $0x28] sm:$0xff]  ;;  %v59_v4 = vld [vmem:[%s1029_s1 + $0x40] sm:$0xff]  ;;  %v751_v5 = vld [vmem:[%s1034_s6 + $0x38] sm:$0xff] }
   0x3   :  { %112 = vrot.lane.b32.xlu1 %v741_v3, %s677_s15  ;;  %116 = vrot.lane.b32.xlu0 %v751_v5, %s677_s15  ;;  %v58_v6 = vld [vmem:[%s1029_s1 + $0x38] sm:$0xff] }
   0x4   :  { %76 = vmatpush.msra.mxu0 %v61_v1  ;;  %v761_v7 = vld [vmem:[%s1034_s6 + $0x18] sm:$0xff] }
   0x5   :  { %108 = vrot.lane.b32.xlu2 %v761_v7, %s677_s15 }
   0x6   :  { %77 = vmatpush.msra.mxu0 %v60_v2 }
   0x8   :  { %78 = vmatpush.msra.mxu0 %v59_v4 }
   0x9   :  { %13 = vsyncpa [#allocation3], 0  ;;  %v57_v8 = vld [vmem:[%s1029_s1 + $0x30] sm:$0xff]  ;;  %v47_v9 = vld [vmem:[%s1034_s6 + $0x20] sm:$0xff]  ;;  %vm64_vm0 = vcmask 785408   ;;  %vm190_vm1 = vcmask 261120  }
   0xa   :  { %79 = vmatpush.msra.mxu0 %v58_v6  ;;  %v56_v10 = vld [vmem:[%s1029_s1 + $0x28] sm:$0xff]  ;;  %v49_v11 = vld [vmem:[%s1034_s6 + $0x30] sm:$0xff]  ;;  %v55_v12 = vld [vmem:[%s1029_s1 + $0x20] sm:$0xff]  ;;  %vm236_vm2 = vcmask 523264   ;;  %s682_s21 = smov 128   ;;  %s683_s22 = smov 8  }
   0xb   :  { %110 = vrot.lane.b32.xlu1 %v47_v9, %s677_s15  ;;  %v784_v13 = vld [vmem:[%s1034_s6 + $0x10] sm:$0xff]  ;;  %114 = vrot.lane.b32.xlu0 %v49_v11, %s677_s15  ;;  %v54_v14 = vld [vmem:[%s1029_s1 + $0x18] sm:$0xff] }
   0xc   :  { %80 = vmatpush.msra.mxu0 %v57_v8  ;;  %v53_v15 = vld [vmem:[%s1029_s1 + $0x10] sm:$0xff]  ;;  %v43_v16 = vld [vmem:[%s1034_s6] sm:$0xff]  ;;  %v52_v17 = vld [vmem:[%s1029_s1 + $0x8] sm:$0xff] }
   0xd   :  { %106 = vrot.lane.b32.xlu2 %v784_v13, %s677_s15  ;;  %v804_v18 = vld [vmem:[%s1034_s6 + $0x8] sm:$0xff]  ;;  %v51_v19 = vld [vmem:[%s1029_s1] sm:$0xff] }
   0xe   :  { %81 = vmatpush.msra.mxu0 %v56_v10  ;;  %v813_v20 = vld [vmem:[%s1028_s0] sm:$0xff]  ;;  %v821_v21 = vld [vmem:[%s1028_s0 + $0x8] sm:$0xff]  ;;  %s679_s0 = smov 64  }
   0xf   :  { %v827_v23 = vld [vmem:[%s1035_s7] sm:$0xff] }
  0x10   :  { %82 = vmatpush.msra.mxu0 %v55_v12  ;;  %v63_v25 = vperm.slane %v827_v23, 0  ;;  %v40_v12 = vld [vmem:[%s1033_s5 + $0x38] sm:$0xff] }
  0x12   :  { %83 = vmatpush.msra.mxu0 %v54_v14  ;;  %v39_v14 = vld [vmem:[%s1033_s5 + $0x30] sm:$0xff] }
  0x13   :  { %102 = vrot.lane.b32.xlu1 %v43_v16, %s677_s15  ;;  %104 = vrot.lane.b32.xlu0 %v804_v18, %s677_s15  ;;  %s678_s15 = smov 96  }
  0x14   :  { %84 = vmatpush.msra.mxu0 %v53_v15  ;;  %v38_v15 = vld [vmem:[%s1033_s5 + $0x28] sm:$0xff] }
  0x16   :  { %85 = vmatpush.msra.mxu0 %v52_v17  ;;  %v35_v17 = vld [vmem:[%s1033_s5 + $0x10] sm:$0xff] }
  0x18   :  { %86 = vmatpush.msra.mxu0 %v51_v19 }
  0x19   :  { %586 = vmatmul.msk.f32.vlgmr.msra.gmra.mxu0 %vm64_vm0, %v813_v20 }
  0x21   :  { %587 = vmatmul.msk.f32.gmra.mxu0 %vm64_vm0, %v821_v21 }
  0x5f   :  { %v109_v30 = vpop.permute.xlu2 %108 }
  0x67   :  { %v107_v37 = vpop.permute.xlu2 %106 }
  0x75   :  { %v117_v22 = vpop.permute.xlu0 %116  ;;  %v113_v24 = vpop.permute.xlu1 %112 }
  0x7d   :  { %v115_v27 = vpop.permute.xlu0 %114  ;;  %v111_v31 = vpop.permute.xlu1 %110 }
  0x85   :  { %v103_v38 = vpop.permute.xlu1 %102  ;;  %v105_v42 = vpop.permute.xlu0 %104 }
  0x96   :  { %v88_v26 = vpop.f32.mrf.mxu0 }
  0x97   :  { %v830_v28 = vadd.f32 %v88_v26, %v63_v25  ;;  %v33_v26 = vld [vmem:[%s1033_s5] sm:$0xff] }
  0x99   :  { %v132_v29 = vmul.f32 %v115_v27, %v830_v28  ;;  %v128_v39 = vmul.f32 %v107_v37, %v830_v28  ;;  %v130_v40 = vmul.f32 %v111_v31, %v830_v28  ;;  %v126_v41 = vmul.f32 %v103_v38, %v830_v28 }
  0x9b   :  { %186 = vrot.lane.b32.xlu0 %v132_v29, %s678_s15 }
  0x9e   :  { %v91_v32 = vpop.f32.mrf.mxu0 }
  0x9f   :  { %v833_v33 = vadd.f32 %v91_v32, %v63_v25 }
  0xa1   :  { %v133_v34 = vmul.f32 %v117_v22, %v833_v33  ;;  %v131_v35 = vmul.f32 %v113_v24, %v833_v33  ;;  %v129_v36 = vmul.f32 %v109_v30, %v833_v33  ;;  %v127_v43 = vmul.f32 %v105_v42, %v833_v33 }
  0xa3   :  { %188 = vrot.lane.b32.xlu2 %v133_v34, %s678_s15  ;;  %184 = vrot.lane.b32.xlu1 %v131_v35, %s678_s15  ;;  %v34_v35 = vld [vmem:[%s1033_s5 + $0x8] sm:$0xff] }
  0xa4   :  { %180 = vrot.lane.b32.xlu0 %v129_v36, %s678_s15 }
  0xab   :  { %182 = vrot.lane.b32.xlu2 %v130_v40, %s678_s15  ;;  %178 = vrot.lane.b32.xlu1 %v128_v39, %s678_s15 }
  0xac   :  { %174 = vrot.lane.b32.xlu0 %v126_v41, %s678_s15 }
  0xb3   :  { %176 = vrot.lane.b32.xlu2 %v127_v43, %s678_s15 }
  0xb4   :  { %148 = vrot.lane.b32.xlu0 %v751_v5, %s679_s0  ;;  %v42_v5 = vld [vmem:[%s1033_s5 + $0x48] sm:$0xff] }
  0xb5   :  { %265 = vmatpush.msra.mxu2 %v42_v5 }
  0xbc   :  { %146 = vrot.lane.b32.xlu0 %v49_v11, %s679_s0  ;;  %v41_v11 = vld [vmem:[%s1033_s5 + $0x40] sm:$0xff] }
  0xbd   :  { %266 = vmatpush.msra.mxu2 %v41_v11 }
  0xbf   :  { %267 = vmatpush.msra.mxu2 %v40_v12 }
  0xc1   :  { %268 = vmatpush.msra.mxu2 %v39_v14 }
  0xc3   :  { %269 = vmatpush.msra.mxu2 %v38_v15 }
  0xc4   :  { %144 = vrot.lane.b32.xlu0 %v741_v3, %s679_s0 }
  0xcc   :  { %142 = vrot.lane.b32.xlu0 %v47_v9, %s679_s0 }
  0xd4   :  { %140 = vrot.lane.b32.xlu0 %v761_v7, %s679_s0 }
  0xdc   :  { %134 = vrot.lane.b32.xlu0 %v43_v16, %s679_s0  ;;  %v36_v16 = vld [vmem:[%s1033_s5 + $0x18] sm:$0xff] }
  0xfd   :  { %v189_v44 = vpop.permute.xlu2 %188 }
  0xfe   :  { %588 = vmatpush.xpose.msk.msra.mxu1 %vm190_vm1, %v189_v44 }
 0x105   :  { %v183_v48 = vpop.permute.xlu2 %182 }
 0x10d   :  { %v187_v45 = vpop.permute.xlu0 %186  ;;  %v177_v51 = vpop.permute.xlu2 %176 }
 0x10e   :  { %589 = vmatpush.xpose.msk.msra.mxu1 %vm190_vm1, %v187_v45 }
 0x115   :  { %v185_v46 = vpop.permute.xlu1 %184 }
 0x116   :  { %v181_v47 = vpop.permute.xlu0 %180  ;;  %590 = vmatpush.xpose.msk.msra.mxu1 %vm190_vm1, %v185_v46  ;;  %v348_v46 = vld [vmem:[%s1030_s2 + $0x18] sm:$0xff] }
 0x11a   :  { %591 = vmatpush.xpose.msk.msra.mxu1 %vm190_vm1, %v183_v48 }
 0x11d   :  { %v179_v50 = vpop.permute.xlu1 %178 }
 0x11e   :  { %v175_v49 = vpop.permute.xlu0 %174  ;;  %592 = vmatpush.xpose.msk.msra.mxu1 %vm190_vm1, %v181_v47  ;;  %v347_v47 = vld [vmem:[%s1030_s2 + $0x10] sm:$0xff] }
 0x122   :  { %593 = vmatpush.xpose.msk.msra.mxu1 %vm190_vm1, %v179_v50 }
 0x126   :  { %v149_v52 = vpop.permute.xlu0 %148  ;;  %594 = vmatpush.xpose.msk.msra.mxu1 %vm190_vm1, %v177_v51 }
 0x127   :  { %v165_v54 = vmul.f32 %v149_v52, %v833_v33 }
 0x12a   :  { %595 = vmatpush.xpose.msk.msra.mxu1 %vm190_vm1, %v175_v49 }
 0x12d   :  { %596 = vmatmul.msk.f32.vlgmr.msra.gmra.mxu1 %vm190_vm1, %v830_v28 }
 0x12e   :  { %v147_v53 = vpop.permute.xlu0 %146 }
 0x12f   :  { %v164_v55 = vmul.f32 %v147_v53, %v830_v28 }
 0x131   :  { %v613_v56 = vpack.i.bf16 %v164_v55, %v165_v54 }
 0x133   :  { %614 = vrot.lane.b32.xlu0 %v613_v56, %s679_s0 }
 0x135   :  { %597 = vmatmul.msk.f32.gmra.mxu1 %vm190_vm1, %v833_v33 }
 0x136   :  { %v145_v57 = vpop.permute.xlu0 %144 }
 0x137   :  { %v163_v59 = vmul.f32 %v145_v57, %v833_v33 }
 0x13e   :  { %v143_v58 = vpop.permute.xlu0 %142 }
 0x13f   :  { %v162_v60 = vmul.f32 %v143_v58, %v830_v28 }
 0x141   :  { %v618_v61 = vpack.i.bf16 %v162_v60, %v163_v59  ;;  %v349_v59 = vperm.slane %v827_v23, 2 }
 0x143   :  { %619 = vrot.lane.b32.xlu0 %v618_v61, %s679_s0 }
 0x146   :  { %v141_v62 = vpop.permute.xlu0 %140 }
 0x147   :  { %v161_v32 = vmul.f32 %v141_v62, %v833_v33 }
 0x14e   :  { %v135_v63 = vpop.permute.xlu0 %134 }
 0x14f   :  { %v158_v40 = vmul.f32 %v135_v63, %v830_v28 }
 0x1a5   :  { %v615_v0 = vpop.permute.xlu0 %614 }
 0x1a6   :  { %v616_v1 = vunpack.i.l.bf16 %v615_v0  ;;  %v617_v2 = vunpack.i.h.bf16 %v615_v0 }
 0x1a8   :  { %330 = vmatpush.msra.mxu3 %v616_v1 }
 0x1aa   :  { %331 = vmatpush.msra.mxu3 %v617_v2  ;;  %v230_v3 = vpop.f32.mrf.mxu1 }
 0x1ab   :  { %v237_v4 = vsel %vm236_vm2, %v230_v3, -inf }
 0x1ac   :  { %238 = vmax.xlane.f32.xlu1 %v237_v4  ;;  %v680_v4 = vmov 32.0  }
 0x1b2   :  { %v233_v6 = vpop.f32.mrf.mxu1 }
 0x1b3   :  { %v240_v7 = vsel %vm236_vm2, %v233_v6, -inf }
 0x1b4   :  { %241 = vmax.xlane.f32.xlu2 %v240_v7 }
 0x1b5   :  { %v620_v8 = vpop.permute.xlu0 %619 }
 0x1b6   :  { %v621_v9 = vunpack.i.l.bf16 %v620_v8  ;;  %v622_v10 = vunpack.i.h.bf16 %v620_v8 }
 0x1b8   :  { %332 = vmatpush.msra.mxu3 %v621_v9 }
 0x1ba   :  { %333 = vmatpush.msra.mxu3 %v622_v10 }
 0x1c5   :  { %136 = vrot.lane.b32.xlu1 %v804_v18, %s679_s0 }
 0x1cc   :  { %138 = vrot.lane.b32.xlu2 %v784_v13, %s679_s0  ;;  %v37_v13 = vld [vmem:[%s1033_s5 + $0x20] sm:$0xff] }
 0x1cd   :  { %270 = vmatpush.msra.mxu2 %v37_v13 }
 0x1cf   :  { %271 = vmatpush.msra.mxu2 %v36_v16 }
 0x1d1   :  { %272 = vmatpush.msra.mxu2 %v35_v17 }
 0x1d3   :  { %368 = vmatpush.msrb.mxu2 %v348_v46 }
 0x1d5   :  { %369 = vmatpush.msrb.mxu2 %v347_v47 }
 0x21f   :  { %v239_v18 = vpop.xlane.xlu1 %238 }
 0x220   :  { %v243_v19 = vsub.f32 %v230_v3, %v239_v18 }
 0x222   :  { %v245_v22 = vmul.f32 1.442695, %v243_v19  ;;  %v441_v19 = vld [vmem:[%s1031_s3 + $0x18] sm:$0xff] }
 0x224   :  { %633 = vpow2.f32 %v245_v22  ;;  %v440_v22 = vld [vmem:[%s1031_s3 + $0x10] sm:$0xff] }
 0x227   :  { %v242_v24 = vpop.xlane.xlu2 %241 }
 0x228   :  { %v244_v25 = vsub.f32 %v233_v6, %v242_v24  ;;  %v439_v24 = vld [vmem:[%s1031_s3 + $0x8] sm:$0xff] }
 0x22a   :  { %v634_v27 = vpop.eup %633  ;;  %v247_v29 = vmul.f32 1.442695, %v244_v25  ;;  %v438_v25 = vld [vmem:[%s1031_s3] sm:$0xff]  ;;  %s574_s3 = sshll.u32 %s1036_s8, 4  ;;  %s575_s3 = int_to_ptr.hbm [resolvable:$true] %s574_s3 }
 0x22b   :  { %v249_v30 = vmul.f32 %v634_v27, %v33_v26 }
 0x22c   :  { %635 = vpow2.f32 %v247_v29 }
 0x22d   :  { %598 = vmatmul.msk.f32.vlgmr.msra.gmra.mxu2 %vm236_vm2, %v249_v30 }
 0x22f   :  { %v139_v31 = vpop.permute.xlu2 %138 }
 0x230   :  { %v160_v34 = vmul.f32 %v139_v31, %v830_v28  ;;  %v346_v28 = vld [vmem:[%s1030_s2 + $0x8] sm:$0xff]  ;;  %v488_v31 = vld [vmem:[%s1032_s4 + $0x70] sm:$0xff] }
 0x231   :  { %370 = vmatpush.msrb.mxu2 %v346_v28  ;;  %v481_v28 = vld [vmem:[%s1032_s4 + $0x38] sm:$0xff] }
 0x232   :  { %v636_v36 = vpop.eup %635  ;;  %v623_v37 = vpack.i.bf16 %v160_v34, %v161_v32  ;;  %v487_v32 = vld [vmem:[%s1032_s4 + $0x68] sm:$0xff] }
 0x233   :  { %v250_v38 = vmul.f32 %v636_v36, %v34_v35  ;;  %v486_v36 = vld [vmem:[%s1032_s4 + $0x60] sm:$0xff] }
 0x234   :  { %624 = vrot.lane.b32.xlu2 %v623_v37, %s679_s0 }
 0x235   :  { %599 = vmatmul.msk.f32.gmra.mxu2 %vm236_vm2, %v250_v38 }
 0x237   :  { %v137_v39 = vpop.permute.xlu1 %136 }
 0x238   :  { %v159_v41 = vmul.f32 %v137_v39, %v833_v33  ;;  %v345_v33 = vld [vmem:[%s1030_s2] sm:$0xff]  ;;  %v485_v39 = vld [vmem:[%s1032_s4 + $0x58] sm:$0xff] }
 0x239   :  { %371 = vmatpush.msrb.mxu2 %v345_v33 }
 0x23a   :  { %v628_v42 = vpack.i.bf16 %v158_v40, %v159_v41  ;;  %v484_v41 = vld [vmem:[%s1032_s4 + $0x50] sm:$0xff] }
 0x23c   :  { %629 = vrot.lane.b32.xlu1 %v628_v42, %s679_s0 }
 0x28e   :  { %v625_v43 = vpop.permute.xlu2 %624 }
 0x28f   :  { %v626_v44 = vunpack.i.l.bf16 %v625_v43  ;;  %v627_v45 = vunpack.i.h.bf16 %v625_v43  ;;  %v483_v43 = vld [vmem:[%s1032_s4 + $0x48] sm:$0xff] }
 0x291   :  { %334 = vmatpush.msra.mxu3 %v626_v44 }
 0x293   :  { %335 = vmatpush.msra.mxu3 %v627_v45  ;;  %v482_v45 = vld [vmem:[%s1032_s4 + $0x40] sm:$0xff] }
 0x2ae   :  { %v630_v48 = vpop.permute.xlu1 %629 }
 0x2af   :  { %v631_v49 = vunpack.i.l.bf16 %v630_v48  ;;  %v632_v51 = vunpack.i.h.bf16 %v630_v48 }
 0x2b0   :  { %v274_v50 = vpop.f32.mrf.mxu2 }
 0x2b1   :  { %637 = vrcp.f32 %v274_v50  ;;  %336 = vmatpush.msra.mxu3 %v631_v49  ;;  %v432_v49 = vperm.slane %v827_v23, 3  ;;  %v480_v50 = vld [vmem:[%s1032_s4 + $0x30] sm:$0xff] }
 0x2b3   :  { %337 = vmatpush.msra.mxu3 %v632_v51 }
 0x2b5   :  { %461 = vmatpush.msrb.mxu3 %v441_v19 }
 0x2b7   :  { %v638_v52 = vpop.eup %637  ;;  %462 = vmatpush.msrb.mxu3 %v440_v22 }
 0x2b8   :  { %v277_v53 = vpop.f32.mrf.mxu2  ;;  %v282_v54 = vmul.f32 %v638_v52, %v249_v30  ;;  %v489_v30 = vld [vmem:[%s1032_s4 + $0x78] sm:$0xff] }
 0x2b9   :  { %639 = vrcp.f32 %v277_v53  ;;  %463 = vmatpush.msrb.mxu3 %v439_v24  ;;  %491 = vmatpush.msrb.mxu0 %v489_v30 }
 0x2ba   :  { %600 = vmatmul.msk.f32.vlgmr.msra.gmra.mxu3 %vm236_vm2, %v282_v54  ;;  %641 = vrcp.f32 %v680_v4  ;;  %v435_v54 = vperm.slane %v827_v23, 4  ;;  %v475_v4 = vld [vmem:[%s1032_s4 + $0x8] sm:$0xff] }
 0x2bb   :  { %464 = vmatpush.msrb.mxu3 %v438_v25  ;;  %492 = vmatpush.msrb.mxu0 %v488_v31 }
 0x2bd   :  { %493 = vmatpush.msrb.mxu0 %v487_v32 }
 0x2bf   :  { %v640_v55 = vpop.eup %639  ;;  %494 = vmatpush.msrb.mxu0 %v486_v36 }
 0x2c0   :  { %v283_v56 = vmul.f32 %v640_v55, %v250_v38  ;;  %v642_v5 = vpop.eup %641  ;;  %v479_v55 = vld [vmem:[%s1032_s4 + $0x28] sm:$0xff] }
 0x2c1   :  { %v388_v6 = vmul.f32 32.0, %v642_v5  ;;  %vm392_vm3 = vweird.f32 %v642_v5  ;;  %495 = vmatpush.msrb.mxu0 %v485_v39 }
 0x2c2   :  { %601 = vmatmul.msk.f32.gmra.mxu3 %vm236_vm2, %v283_v56 }
 0x2c3   :  { %v389_v7 = vsub.f32 1.0, %v388_v6  ;;  %496 = vmatpush.msrb.mxu0 %v484_v41  ;;  %v442_v6 = vperm.slane %v827_v23, 1 }
 0x2c5   :  { %v390_v8 = vmul.f32 %v642_v5, %v389_v7  ;;  %497 = vmatpush.msrb.mxu0 %v483_v43 }
 0x2c7   :  { %v391_v9 = vadd.f32 %v642_v5, %v390_v8  ;;  %498 = vmatpush.msrb.mxu0 %v482_v45 }
 0x2c9   :  { %v934_v10 = vsel %vm392_vm3, %v642_v5, %v391_v9  ;;  %499 = vmatpush.msrb.mxu0 %v481_v28  ;;  %v474_v5 = vld [vmem:[%s1032_s4] sm:$0xff] }
 0x2cb   :  { %500 = vmatpush.msrb.mxu0 %v480_v50 }
 0x2cd   :  { %501 = vmatpush.msrb.mxu0 %v479_v55 }
 0x33d   :  { %v339_v57 = vpop.f32.mrf.mxu3 }
 0x33e   :  { %602 = vmatmul.msk.f32.vlgmr.msrb.gmra.mxu2 %vm190_vm1, %v339_v57 }
 0x345   :  { %v342_v58 = vpop.f32.mrf.mxu3 }
 0x346   :  { %603 = vmatmul.msk.f32.gmra.mxu2 %vm190_vm1, %v342_v58  ;;  %v478_v58 = vld [vmem:[%s1032_s4 + $0x20] sm:$0xff] }
 0x347   :  { %502 = vmatpush.msrb.mxu0 %v478_v58 }
 0x3c1   :  { %v373_v60 = vpop.f32.mrf.mxu2 }
 0x3c2   :  { %v374_v61 = vadd.f32 %v373_v60, %v349_v59 }
 0x3c4   :  { %v379_v62 = vadd.f32 %v374_v61, %v813_v20  ;;  %v477_v61 = vld [vmem:[%s1032_s4 + $0x18] sm:$0xff] }
 0x3c5   :  { %503 = vmatpush.msrb.mxu0 %v477_v61 }
 0x3c6   :  { %v381_v63 = vsel %vm190_vm1, %v379_v62, 0.0 }
 0x3c7   :  { %382 = vadd.xlane.f32.xlu0 %v381_v63 }
 0x3c9   :  { %v376_v0 = vpop.f32.mrf.mxu2 }
 0x3ca   :  { %v377_v1 = vadd.f32 %v376_v0, %v349_v59 }
 0x3cc   :  { %v380_v2 = vadd.f32 %v377_v1, %v821_v21 }
 0x3ce   :  { %v384_v3 = vsel %vm190_vm1, %v380_v2, 0.0 }
 0x3cf   :  { %385 = vadd.xlane.f32.xlu2 %v384_v3  ;;  %v476_v3 = vld [vmem:[%s1032_s4 + $0x10] sm:$0xff]  ;;  %s681_s4 = smov [#allocation2]  }
 0x3d0   :  { %504 = vmatpush.msrb.mxu0 %v476_v3  ;;  %s572_s18 = sshll.u32 %s681_s4, 4  ;;  %s573_s18 = int_to_ptr.vmem [resolvable:$true] %s572_s18 }
 0x3d2   :  { %505 = vmatpush.msrb.mxu0 %v475_v4 }
 0x3d4   :  { %506 = vmatpush.msrb.mxu0 %v474_v5 }
 0x43a   :  { %v383_v20 = vpop.xlane.xlu0 %382 }
 0x43b   :  { %v394_v11 = vmul.f32 %v934_v10, %v383_v20 }
 0x43d   :  { %v396_v12 = vsub.f32 %v379_v62, %v394_v11 }
 0x43f   :  { %v398_v14 = vmul.f32 %v396_v12, %v396_v12 }
 0x441   :  { %v400_v21 = vsel %vm190_vm1, %v398_v14, 0.0  ;;  %v490_v14 = vperm.slane %v827_v23, 7 }
 0x442   :  { %401 = vadd.xlane.f32.xlu1 %v400_v21  ;;  %v386_v15 = vpop.xlane.xlu2 %385 }
 0x443   :  { %v395_v13 = vmul.f32 %v934_v10, %v386_v15 }
 0x445   :  { %v939_v16 = vsub.f32 %v380_v2, %v395_v13 }
 0x447   :  { %v399_v17 = vmul.f32 %v939_v16, %v939_v16 }
 0x449   :  { %v403_v18 = vsel %vm190_vm1, %v399_v17, 0.0 }
 0x44a   :  { %404 = vadd.xlane.f32.xlu0 %v403_v18 }
 0x4b5   :  { %v402_v26 = vpop.xlane.xlu1 %401 }
 0x4b6   :  { %v406_v27 = vmul.f32 %v402_v26, %v934_v10 }
 0x4b8   :  { %v408_v29 = vadd.f32 1e-05, %v406_v27 }
 0x4ba   :  { %643 = vrsqrt.f32 %v408_v29  ;;  %vm416_vm5 = vweird.f32 %v408_v29 }
 0x4bd   :  { %v405_v34 = vpop.xlane.xlu0 %404 }
 0x4be   :  { %v407_v35 = vmul.f32 %v405_v34, %v934_v10 }
 0x4c0   :  { %v644_v37 = vpop.eup %643  ;;  %v409_v38 = vadd.f32 1e-05, %v407_v35 }
 0x4c1   :  { %v411_v40 = vmul.f32 %v644_v37, %v408_v29  ;;  %vm417_vm4 = vweird.f32 %v644_v37 }
 0x4c2   :  { %645 = vrsqrt.f32 %v409_v38  ;;  %vm418_vm6 = vmor %vm416_vm5, %vm417_vm4  ;;  %vm426_vm8 = vweird.f32 %v409_v38 }
 0x4c3   :  { %v412_v42 = vmul.f32 %v644_v37, %v411_v40 }
 0x4c5   :  { %v413_v44 = vmul.f32 0.5, %v412_v42 }
 0x4c7   :  { %v414_v46 = vsub.f32 1.5, %v413_v44 }
 0x4c8   :  { %v646_v47 = vpop.eup %645 }
 0x4c9   :  { %v415_v33 = vmul.f32 %v644_v37, %v414_v46  ;;  %v421_v48 = vmul.f32 %v646_v47, %v409_v38  ;;  %vm427_vm7 = vweird.f32 %v646_v47 }
 0x4ca   :  { %vm428_vm9 = vmor %vm426_vm8, %vm427_vm7 }
 0x4cb   :  { %v419_v51 = vsel %vm418_vm6, %v644_v37, %v415_v33  ;;  %v422_v52 = vmul.f32 %v646_v47, %v421_v48  ;;  %v560_v48 = vperm.slane %v827_v23, 5 }
 0x4cc   :  { %v430_v53 = vmul.f32 %v419_v51, %v396_v12 }
 0x4cd   :  { %v423_v56 = vmul.f32 0.5, %v422_v52 }
 0x4ce   :  { %v433_v57 = vmul.f32 %v432_v49, %v430_v53 }
 0x4cf   :  { %v424_v59 = vsub.f32 1.5, %v423_v56 }
 0x4d0   :  { %v436_v60 = vadd.f32 %v435_v54, %v433_v57 }
 0x4d1   :  { %v425_v62 = vmul.f32 %v646_v47, %v424_v59 }
 0x4d2   :  { %604 = vmatmul.msk.f32.vlgmr.msrb.gmra.mxu3 %vm190_vm1, %v436_v60 }
 0x4d3   :  { %v429_v63 = vsel %vm428_vm9, %v646_v47, %v425_v62 }
 0x4d4   :  { %v431_v0 = vmul.f32 %v429_v63, %v939_v16 }
 0x4d6   :  { %v434_v1 = vmul.f32 %v432_v49, %v431_v0 }
 0x4d8   :  { %v437_v2 = vadd.f32 %v435_v54, %v434_v1 }
 0x4da   :  { %605 = vmatmul.msk.f32.gmra.mxu3 %vm190_vm1, %v437_v2 }
 0x555   :  { %v466_v7 = vpop.f32.mrf.mxu3 }
 0x556   :  { %v467_v8 = vadd.f32 %v466_v7, %v442_v6 }
 0x558   :  { %v472_v9 = vmax.f32 %v467_v8, 0.0 }
 0x55a   :  { %507 = vmatmul.f32.vlgmr.msrb.gmra.mxu0 %v472_v9 }
 0x55d   :  { %v469_v20 = vpop.f32.mrf.mxu3 }
 0x55e   :  { %v470_v11 = vadd.f32 %v469_v20, %v442_v6 }
 0x560   :  { %v473_v12 = vmax.f32 %v470_v11, 0.0 }
 0x562   :  { %510 = vmatmul.f32.gmra.mxu0 %v473_v12 }
 0x5d7   :  { %v508_v21 = vpop.f32.mrf.mxu0 }
 0x5d8   :  { %v509_v15 = vadd.f32 %v508_v21, %v490_v14 }
 0x5da   :  { %v514_v13 = vadd.f32 %v509_v15, %v436_v60 }
 0x5dc   :  { %v516_v16 = vsel %vm190_vm1, %v514_v13, 0.0 }
 0x5dd   :  { %517 = vadd.xlane.f32.xlu2 %v516_v16 }
 0x5df   :  { %v511_v17 = vpop.f32.mrf.mxu0 }
 0x5e0   :  { %v512_v18 = vadd.f32 %v511_v17, %v490_v14 }
 0x5e2   :  { %v515_v19 = vadd.f32 %v512_v18, %v437_v2 }
 0x5e4   :  { %v519_v22 = vsel %vm190_vm1, %v515_v19, 0.0 }
 0x5e5   :  { %520 = vadd.xlane.f32.xlu1 %v519_v22 }
 0x650   :  { %v518_v24 = vpop.xlane.xlu2 %517 }
 0x651   :  { %v522_v25 = vmul.f32 %v518_v24, %v934_v10 }
 0x653   :  { %v524_v26 = vsub.f32 %v514_v13, %v522_v25 }
 0x655   :  { %v526_v27 = vmul.f32 %v524_v26, %v524_v26 }
 0x657   :  { %v528_v29 = vsel %vm190_vm1, %v526_v27, 0.0 }
 0x658   :  { %v521_v30 = vpop.xlane.xlu1 %520  ;;  %529 = vadd.xlane.f32.xlu0 %v528_v29 }
 0x659   :  { %v523_v31 = vmul.f32 %v521_v30, %v934_v10 }
 0x65b   :  { %v525_v32 = vsub.f32 %v515_v19, %v523_v31 }
 0x65d   :  { %v527_v34 = vmul.f32 %v525_v32, %v525_v32 }
 0x65f   :  { %v531_v35 = vsel %vm190_vm1, %v527_v34, 0.0 }
 0x660   :  { %532 = vadd.xlane.f32.xlu2 %v531_v35 }
 0x6cb   :  { %v530_v36 = vpop.xlane.xlu0 %529 }
 0x6cc   :  { %v534_v37 = vmul.f32 %v530_v36, %v934_v10 }
 0x6ce   :  { %v536_v38 = vadd.f32 1e-05, %v534_v37 }
 0x6d0   :  { %647 = vrsqrt.f32 %v536_v38  ;;  %vm544_vm11 = vweird.f32 %v536_v38 }
 0x6d3   :  { %v533_v39 = vpop.xlane.xlu2 %532 }
 0x6d4   :  { %v535_v40 = vmul.f32 %v533_v39, %v934_v10  ;;  %v563_v10 = vperm.slane %v827_v23, 6 }
 0x6d6   :  { %v648_v41 = vpop.eup %647  ;;  %v537_v42 = vadd.f32 1e-05, %v535_v40 }
 0x6d7   :  { %v539_v43 = vmul.f32 %v648_v41, %v536_v38  ;;  %vm545_vm10 = vweird.f32 %v648_v41 }
 0x6d8   :  { %649 = vrsqrt.f32 %v537_v42  ;;  %vm546_vm12 = vmor %vm544_vm11, %vm545_vm10  ;;  %vm554_vm14 = vweird.f32 %v537_v42 }
 0x6d9   :  { %v540_v44 = vmul.f32 %v648_v41, %v539_v43 }
 0x6db   :  { %v541_v45 = vmul.f32 0.5, %v540_v44 }
 0x6dd   :  { %v542_v46 = vsub.f32 1.5, %v541_v45 }
 0x6de   :  { %v650_v47 = vpop.eup %649 }
 0x6df   :  { %v543_v28 = vmul.f32 %v648_v41, %v542_v46  ;;  %v549_v33 = vmul.f32 %v650_v47, %v537_v42  ;;  %vm555_vm13 = vweird.f32 %v650_v47 }
 0x6e0   :  { %vm556_vm15 = vmor %vm554_vm14, %vm555_vm13 }
 0x6e1   :  { %v547_v49 = vsel %vm546_vm12, %v648_v41, %v543_v28  ;;  %v550_v50 = vmul.f32 %v650_v47, %v549_v33 }
 0x6e2   :  { %v558_v51 = vmul.f32 %v547_v49, %v524_v26 }
 0x6e3   :  { %v551_v52 = vmul.f32 0.5, %v550_v50 }
 0x6e4   :  { %v561_v53 = vmul.f32 %v560_v48, %v558_v51 }
 0x6e5   :  { %v552_v54 = vsub.f32 1.5, %v551_v52 }
 0x6e6   :  { %v564_v55 = vadd.f32 %v563_v10, %v561_v53 }
 0x6e7   :  { %v553_v56 = vmul.f32 %v650_v47, %v552_v54 }
 0x6e8   :  { %566 = vst.msk [vmem:[#allocation2] sm:$0xff] %vm190_vm1, %v564_v55 }
 0x6e9   :  { %v557_v57 = vsel %vm556_vm15, %v650_v47, %v553_v56 }
 0x6ea   :  { %v559_v58 = vmul.f32 %v557_v57, %v525_v32 }
 0x6ec   :  { %v562_v59 = vmul.f32 %v560_v48, %v559_v58 }
 0x6ee   :  { %v565_v23 = vadd.f32 %v563_v10, %v562_v59 }
 0x6f0   :  { %567 = vst.msk [vmem:[#allocation2 + $0x8] sm:$0xff] %vm190_vm1, %v565_v23 }
 0x6f1   :  { %580 = dma.vmem_to_hbm [thread:$0]  %s573_s18, 256, %s575_s3, [#allocation3], %s682_s21, %s682_s21, %s683_s22  }
 0x6f2   :  { %675 = dma.done.wait [#allocation3], 256  }
 0x6f3   :  { %676 = vsyncadd [#allocation3], 4294967040 }
 0x6f4   :  { %585 = vsyncpa [#allocation3], 1 }

</bundles_post_ra>
